<compile_context>
chip_gen: v7x
topology: tpu7x:2x2x1
jax: 0.10.0
libtpu: 0.0.40
codegen_flags: <defaults>
</compile_context>

<pallas_src>
import functools

import jax
import jax.numpy as jnp
from jax.experimental import pallas as pl
from jax.experimental.pallas import tpu as pltpu


# ------------------------------ fused kernel -------------------------------- #

def _gnn_fused_kernel(e1_ref, e2_ref, w1t_ref, b1_ref, w2t_ref, b2_ref,
                      x_ref, g1wt_ref, g1b_ref, g2wt_ref, g2b_ref,
                      out_ref, h1_ref, *, alpha, k, n, batch):
    f32 = jnp.float32

    # ---------------- Directed_A: adj = relu(tanh(alpha * m1 @ m2^T)) ----------------
    m1 = jnp.tanh(alpha * (jnp.dot(e1_ref[...], w1t_ref[...],
                                   preferred_element_type=f32) + b1_ref[...]))
    m2 = jnp.tanh(alpha * (jnp.dot(e2_ref[...], w2t_ref[...],
                                   preferred_element_type=f32) + b2_ref[...]))
    s = jax.lax.dot_general(m1, m2, (((1,), (1,)), ((), ())),
                            preferred_element_type=f32)
    adj = jnp.maximum(jnp.tanh(alpha * s), 0.0)                          # (N, N)

    # -------- row-wise top-k mask via rank counting (no sort / scatter / RNG) --------
    # TODO(synk): PyTorch adds rand()*0.01 noise purely to break ties before topk; here
    # ties are broken deterministically toward the lower column index instead.
    if k:
        a_cand = adj[:, :, None]                                         # (N, N, 1)
        a_other = adj[:, None, :]                                        # (N, 1, N)
        j_cand = jax.lax.broadcasted_iota(jnp.int32, (n, n, n), 1)
        j_other = jax.lax.broadcasted_iota(jnp.int32, (n, n, n), 2)
        beats = jnp.logical_or(
            a_other > a_cand,
            jnp.logical_and(a_other == a_cand, j_other < j_cand))
        rank = jnp.sum(beats.astype(jnp.int32), axis=-1)                 # (N, N)
        adj = jnp.where(rank < k, adj, 0.0)

    # ---- batch-invariant symmetric normalization, hoisted (computed exactly once) ----
    rr = jax.lax.broadcasted_iota(jnp.int32, (n, n), 0)
    cc = jax.lax.broadcasted_iota(jnp.int32, (n, n), 1)
    adj_i = adj + jnp.where(rr == cc, 1.0, 0.0)                          # A + I
    norm = jax.lax.rsqrt(jnp.sum(adj_i, axis=1, keepdims=True))          # (N, 1)
    anl = norm * adj_i                                                   # left-normalized
    # D^-1/2 (A+I) D^-1/2 @ h  ==  anl @ (norm * h)   (right norm folded into rhs rows)

    # ---------------- GCLayer 1 + ReLU ----------------
    # dense over the whole (B*N, Din) slab in one MXU call
    h1d = jnp.dot(x_ref[...], g1wt_ref[...], preferred_element_type=f32) + g1b_ref[...]
    for b in range(batch):                                               # static unroll
        hb = h1d[b * n:(b + 1) * n, :]
        h1_ref[b * n:(b + 1) * n, :] = jnp.maximum(
            jnp.dot(anl, norm * hb, preferred_element_type=f32), 0.0)

    # ---------------- GCLayer 2 + ReLU ----------------
    h2d = jnp.dot(h1_ref[...], g2wt_ref[...], preferred_element_type=f32) + g2b_ref[...]
    for b in range(batch):
        hb = h2d[b * n:(b + 1) * n, :]
        out_ref[b * n:(b + 1) * n, :] = jnp.maximum(
            jnp.dot(anl, norm * hb, preferred_element_type=f32), 0.0)


# ------------------------------ wrapper -------------------------------------- #

def gnn_encoder_forward(x, params, *, alpha, k):
    """x: (B, window_size, num_sensors), matching the PyTorch module's input."""
    B, W, N = x.shape
    d1 = params["g1_w"].shape[0]
    d2 = params["g2_w"].shape[0]
    x_flat = jnp.transpose(x, (0, 2, 1)).reshape(B * N, W)               # (B*N, W)

    kernel = functools.partial(_gnn_fused_kernel, alpha=alpha, k=k, n=N, batch=B)
    vmem = pl.BlockSpec(memory_space=pltpu.MemorySpace.VMEM)             # whole array in VMEM
    out = pl.pallas_call(
        kernel,
        out_shape=jax.ShapeDtypeStruct((B * N, d2), jnp.float32),
        in_specs=[vmem] * 11,
        out_specs=vmem,
        scratch_shapes=[pltpu.VMEM((B * N, d1), jnp.float32)],           # h1 stays in VMEM
    )(
        params["e1"], params["e2"],
        params["l1_w"].T, params["l1_b"].reshape(1, W),
        params["l2_w"].T, params["l2_b"].reshape(1, W),
        x_flat,
        params["g1_w"].T, params["g1_b"].reshape(1, d1),
        params["g2_w"].T, params["g2_b"].reshape(1, d2),
    )
    return out.reshape(B, N, d2)


# --------------------------- pure-JAX reference ------------------------------ #

def gnn_encoder_reference(x, params, *, alpha, k):
    xt = jnp.transpose(x, (0, 2, 1))
    m1 = jnp.tanh(alpha * (params["e1"] @ params["l1_w"].T + params["l1_b"]))
    m2 = jnp.tanh(alpha * (params["e2"] @ params["l2_w"].T + params["l2_b"]))
    adj = jax.nn.relu(jnp.tanh(alpha * (m1 @ m2.T)))
    if k:
        # same deterministic tie-break (lower column index wins) as the kernel
        a_cand = adj[:, :, None]
        a_other = adj[:, None, :]
        j = jnp.arange(adj.shape[1])
        beats = (a_other > a_cand) | ((a_other == a_cand) & (j[None, None, :] < j[None, :, None]))
        rank = jnp.sum(beats, axis=-1)
        adj = jnp.where(rank < k, adj, 0.0)

    def gcl(a, xx, w, b):
        Nn = a.shape[0]
        a = a + jnp.eye(Nn, dtype=a.dtype)
        norm = jnp.sum(a, axis=1) ** (-0.5)
        an = norm[None, :] * a * norm[:, None]
        h = xx @ w.T + b
        return jnp.einsum("nm,bmd->bnd", an, h)

    h1 = jax.nn.relu(gcl(adj, xt, params["g1_w"], params["g1_b"]))
    h2 = jax.nn.relu(gcl(adj, h1, params["g2_w"], params["g2_b"]))
    return h2


# --------------------------------- main -------------------------------------- #

if __name__ == "__main__":
    num_sensors = 8       # N (graph nodes)
    window_size = 32      # W (features per node)
    alpha = 3.0
    k = 3
    batch = 2

    key = jax.random.PRNGKey(0)
    keys = jax.random.split(key, 11)

    def lin_init(kw, kb, out_dim, in_dim):
        bound = 1.0 / jnp.sqrt(in_dim)
        w = jax.random.uniform(kw, (out_dim, in_dim), jnp.float32, -bound, bound)
        b = jax.random.uniform(kb, (out_dim,), jnp.float32, -bound, bound)
        return w, b

    l1_w, l1_b = lin_init(keys[0], keys[1], window_size, window_size)
    l2_w, l2_b = lin_init(keys[2], keys[3], window_size, window_size)
    g1_w, g1_b = lin_init(keys[4], keys[5], window_size // 2, window_size)
    g2_w, g2_b = lin_init(keys[6], keys[7], window_size // 8, window_size // 2)

    params = {
        "e1": jax.random.normal(keys[8], (num_sensors, window_size), jnp.float32),
        "e2": jax.random.normal(keys[9], (num_sensors, window_size), jnp.float32),
        "l1_w": l1_w, "l1_b": l1_b,
        "l2_w": l2_w, "l2_b": l2_b,
        "g1_w": g1_w, "g1_b": g1_b,
        "g2_w": g2_w, "g2_b": g2_b,
    }

    x = jax.random.normal(keys[10], (batch, window_size, num_sensors), jnp.float32)

    out = gnn_encoder_forward(x, params, alpha=alpha, k=k)
    out = jax.block_until_ready(out)

    ref = gnn_encoder_reference(x, params, alpha=alpha, k=k)
    ref = jax.block_until_ready(ref)

    assert out.shape == (batch, num_sensors, window_size // 8), out.shape
    assert jnp.allclose(out, ref, rtol=1e-4, atol=1e-4), \
        f"max abs err {jnp.max(jnp.abs(out - ref))}"

    print("KERNEL_OK")
</pallas_src>

<mosaic_0001>
module attributes {stable_mosaic.version = 11 : i64} {
  func.func @_gnn_fused_kernel(%arg0: memref<8x32xf32, #tpu.memory_space<vmem>>, %arg1: memref<8x32xf32, #tpu.memory_space<vmem>>, %arg2: memref<32x32xf32, #tpu.memory_space<vmem>>, %arg3: memref<1x32xf32, #tpu.memory_space<vmem>>, %arg4: memref<32x32xf32, #tpu.memory_space<vmem>>, %arg5: memref<1x32xf32, #tpu.memory_space<vmem>>, %arg6: memref<16x32xf32, #tpu.memory_space<vmem>>, %arg7: memref<32x16xf32, #tpu.memory_space<vmem>>, %arg8: memref<1x16xf32, #tpu.memory_space<vmem>>, %arg9: memref<16x4xf32, #tpu.memory_space<vmem>>, %arg10: memref<1x4xf32, #tpu.memory_space<vmem>>, %arg11: memref<16x4xf32, #tpu.memory_space<vmem>>, %arg12: memref<16x16xf32, #tpu.memory_space<vmem>>) attributes {dimension_semantics = [], scalar_prefetch = 0 : i64, scratch_operands = 1 : i64, tpu.core_type = #tpu.core_type<tc>} {
    %c0 = arith.constant 0 : index
    %c0_0 = arith.constant 0 : index
    %0 = vector.load %arg0[%c0, %c0_0] : memref<8x32xf32, #tpu.memory_space<vmem>>, vector<8x32xf32>
    %c0_1 = arith.constant 0 : index
    %c0_2 = arith.constant 0 : index
    %1 = vector.load %arg2[%c0_1, %c0_2] : memref<32x32xf32, #tpu.memory_space<vmem>>, vector<32x32xf32>
    %cst = arith.constant dense<0.000000e+00> : vector<8x32xf32>
    %2 = tpu.matmul %0, %1, %cst {dimension_numbers = #tpu.dot_dimension_numbers<[1], [0], [0], [1], [0, 0, 1, 1], [], []>} : vector<8x32xf32>, vector<32x32xf32>, vector<8x32xf32> -> vector<8x32xf32>
    %c0_3 = arith.constant 0 : index
    %c0_4 = arith.constant 0 : index
    %3 = vector.load %arg3[%c0_3, %c0_4] : memref<1x32xf32, #tpu.memory_space<vmem>>, vector<1x32xf32>
    %4 = vector.broadcast %3 : vector<1x32xf32> to vector<8x32xf32>
    %5 = arith.addf %2, %4 : vector<8x32xf32>
    %cst_5 = arith.constant 3.000000e+00 : f32
    %6 = vector.broadcast %cst_5 : f32 to vector<8x32xf32>
    %7 = arith.mulf %6, %5 : vector<8x32xf32>
    %8 = math.tanh %7 : vector<8x32xf32>
    %c0_6 = arith.constant 0 : index
    %c0_7 = arith.constant 0 : index
    %9 = vector.load %arg1[%c0_6, %c0_7] : memref<8x32xf32, #tpu.memory_space<vmem>>, vector<8x32xf32>
    %c0_8 = arith.constant 0 : index
    %c0_9 = arith.constant 0 : index
    %10 = vector.load %arg4[%c0_8, %c0_9] : memref<32x32xf32, #tpu.memory_space<vmem>>, vector<32x32xf32>
    %cst_10 = arith.constant dense<0.000000e+00> : vector<8x32xf32>
    %11 = tpu.matmul %9, %10, %cst_10 {dimension_numbers = #tpu.dot_dimension_numbers<[1], [0], [0], [1], [0, 0, 1, 1], [], []>} : vector<8x32xf32>, vector<32x32xf32>, vector<8x32xf32> -> vector<8x32xf32>
    %c0_11 = arith.constant 0 : index
    %c0_12 = arith.constant 0 : index
    %12 = vector.load %arg5[%c0_11, %c0_12] : memref<1x32xf32, #tpu.memory_space<vmem>>, vector<1x32xf32>
    %13 = vector.broadcast %12 : vector<1x32xf32> to vector<8x32xf32>
    %14 = arith.addf %11, %13 : vector<8x32xf32>
    %cst_13 = arith.constant 3.000000e+00 : f32
    %15 = vector.broadcast %cst_13 : f32 to vector<8x32xf32>
    %16 = arith.mulf %15, %14 : vector<8x32xf32>
    %17 = math.tanh %16 : vector<8x32xf32>
    %cst_14 = arith.constant dense<0.000000e+00> : vector<8x8xf32>
    %18 = tpu.matmul %8, %17, %cst_14 {dimension_numbers = #tpu.dot_dimension_numbers<[1], [1], [0], [0], [0, 0, 1, 0], [], []>} : vector<8x32xf32>, vector<8x32xf32>, vector<8x8xf32> -> vector<8x8xf32>
    %cst_15 = arith.constant 3.000000e+00 : f32
    %19 = vector.broadcast %cst_15 : f32 to vector<8x8xf32>
    %20 = arith.mulf %19, %18 : vector<8x8xf32>
    %21 = math.tanh %20 : vector<8x8xf32>
    %cst_16 = arith.constant 0.000000e+00 : f32
    %22 = vector.broadcast %cst_16 : f32 to vector<8x8xf32>
    %23 = arith.maximumf %21, %22 : vector<8x8xf32>
    %24 = vector.shape_cast %23 : vector<8x8xf32> to vector<8x8x1xf32>
    %25 = vector.shape_cast %23 : vector<8x8xf32> to vector<8x1x8xf32>
    %26 = tpu.iota {dimensions = array<i32: 1>} : vector<8x8x8xi32>
    %27 = tpu.iota {dimensions = array<i32: 2>} : vector<8x8x8xi32>
    %28 = vector.broadcast %25 : vector<8x1x8xf32> to vector<8x8x8xf32>
    %29 = vector.broadcast %24 : vector<8x8x1xf32> to vector<8x8x8xf32>
    %30 = arith.cmpf ogt, %28, %29 : vector<8x8x8xf32>
    %31 = vector.broadcast %25 : vector<8x1x8xf32> to vector<8x8x8xf32>
    %32 = vector.broadcast %24 : vector<8x8x1xf32> to vector<8x8x8xf32>
    %33 = arith.cmpf oeq, %31, %32 : vector<8x8x8xf32>
    %34 = arith.cmpi slt, %27, %26 : vector<8x8x8xi32>
    %35 = arith.andi %33, %34 : vector<8x8x8xi1>
    %36 = arith.ori %30, %35 : vector<8x8x8xi1>
    %37 = arith.extui %36 : vector<8x8x8xi1> to vector<8x8x8xi32>
    %cst_17 = arith.constant dense<0> : vector<8x8xi32>
    %38 = vector.multi_reduction <add>, %37, %cst_17 [2] : vector<8x8x8xi32> to vector<8x8xi32>
    %c3_i32 = arith.constant 3 : i32
    %39 = vector.broadcast %c3_i32 : i32 to vector<8x8xi32>
    %40 = arith.cmpi slt, %38, %39 : vector<8x8xi32>
    %cst_18 = arith.constant 0.000000e+00 : f32
    %41 = vector.broadcast %cst_18 : f32 to vector<8x8xf32>
    %42 = arith.select %40, %23, %41 : vector<8x8xi1>, vector<8x8xf32>
    %43 = tpu.iota {dimensions = array<i32: 0>} : vector<8x8xi32>
    %44 = tpu.iota {dimensions = array<i32: 1>} : vector<8x8xi32>
    %45 = arith.cmpi eq, %43, %44 : vector<8x8xi32>
    %cst_19 = arith.constant 1.000000e+00 : f32
    %cst_20 = arith.constant 0.000000e+00 : f32
    %46 = vector.broadcast %cst_19 : f32 to vector<8x8xf32>
    %47 = vector.broadcast %cst_20 : f32 to vector<8x8xf32>
    %48 = arith.select %45, %46, %47 : vector<8x8xi1>, vector<8x8xf32>
    %49 = arith.addf %42, %48 : vector<8x8xf32>
    %cst_21 = arith.constant dense<0.000000e+00> : vector<8xf32>
    %50 = vector.multi_reduction <add>, %49, %cst_21 [1] : vector<8x8xf32> to vector<8xf32>
    %51 = vector.shape_cast %50 : vector<8xf32> to vector<8x1xf32>
    %52 = math.rsqrt %51 : vector<8x1xf32>
    %53 = vector.broadcast %52 : vector<8x1xf32> to vector<8x8xf32>
    %54 = arith.mulf %53, %49 : vector<8x8xf32>
    %c0_22 = arith.constant 0 : index
    %c0_23 = arith.constant 0 : index
    %55 = vector.load %arg6[%c0_22, %c0_23] : memref<16x32xf32, #tpu.memory_space<vmem>>, vector<16x32xf32>
    %c0_24 = arith.constant 0 : index
    %c0_25 = arith.constant 0 : index
    %56 = vector.load %arg7[%c0_24, %c0_25] : memref<32x16xf32, #tpu.memory_space<vmem>>, vector<32x16xf32>
    %cst_26 = arith.constant dense<0.000000e+00> : vector<16x16xf32>
    %57 = tpu.matmul %55, %56, %cst_26 {dimension_numbers = #tpu.dot_dimension_numbers<[1], [0], [0], [1], [0, 0, 1, 1], [], []>} : vector<16x32xf32>, vector<32x16xf32>, vector<16x16xf32> -> vector<16x16xf32>
    %c0_27 = arith.constant 0 : index
    %c0_28 = arith.constant 0 : index
    %58 = vector.load %arg8[%c0_27, %c0_28] : memref<1x16xf32, #tpu.memory_space<vmem>>, vector<1x16xf32>
    %59 = vector.broadcast %58 : vector<1x16xf32> to vector<16x16xf32>
    %60 = arith.addf %57, %59 : vector<16x16xf32>
    %61 = vector.extract_strided_slice %60 {offsets = [0, 0], sizes = [8, 16], strides = [1, 1]} : vector<16x16xf32> to vector<8x16xf32>
    %62 = vector.broadcast %52 : vector<8x1xf32> to vector<8x16xf32>
    %63 = arith.mulf %62, %61 : vector<8x16xf32>
    %cst_29 = arith.constant dense<0.000000e+00> : vector<8x16xf32>
    %64 = tpu.matmul %54, %63, %cst_29 {dimension_numbers = #tpu.dot_dimension_numbers<[1], [0], [0], [1], [0, 0, 1, 1], [], []>} : vector<8x8xf32>, vector<8x16xf32>, vector<8x16xf32> -> vector<8x16xf32>
    %cst_30 = arith.constant 0.000000e+00 : f32
    %65 = vector.broadcast %cst_30 : f32 to vector<8x16xf32>
    %66 = arith.maximumf %64, %65 : vector<8x16xf32>
    %c0_31 = arith.constant 0 : index
    %c0_32 = arith.constant 0 : index
    %67 = vector.load %arg12[%c0_31, %c0_32] : memref<16x16xf32, #tpu.memory_space<vmem>>, vector<8x16xf32>
    tpu.vector_store %arg12[%c0_31, %c0_32], %66 {strides = array<i32>} : memref<16x16xf32, #tpu.memory_space<vmem>>, vector<8x16xf32>,
    %68 = vector.extract_strided_slice %60 {offsets = [8, 0], sizes = [8, 16], strides = [1, 1]} : vector<16x16xf32> to vector<8x16xf32>
    %69 = vector.broadcast %52 : vector<8x1xf32> to vector<8x16xf32>
    %70 = arith.mulf %69, %68 : vector<8x16xf32>
    %cst_33 = arith.constant dense<0.000000e+00> : vector<8x16xf32>
    %71 = tpu.matmul %54, %70, %cst_33 {dimension_numbers = #tpu.dot_dimension_numbers<[1], [0], [0], [1], [0, 0, 1, 1], [], []>} : vector<8x8xf32>, vector<8x16xf32>, vector<8x16xf32> -> vector<8x16xf32>
    %cst_34 = arith.constant 0.000000e+00 : f32
    %72 = vector.broadcast %cst_34 : f32 to vector<8x16xf32>
    %73 = arith.maximumf %71, %72 : vector<8x16xf32>
    %c8 = arith.constant 8 : index
    %c0_35 = arith.constant 0 : index
    %74 = vector.load %arg12[%c8, %c0_35] : memref<16x16xf32, #tpu.memory_space<vmem>>, vector<8x16xf32>
    tpu.vector_store %arg12[%c8, %c0_35], %73 {strides = array<i32>} : memref<16x16xf32, #tpu.memory_space<vmem>>, vector<8x16xf32>,
    %c0_36 = arith.constant 0 : index
    %c0_37 = arith.constant 0 : index
    %75 = vector.load %arg12[%c0_36, %c0_37] : memref<16x16xf32, #tpu.memory_space<vmem>>, vector<16x16xf32>
    %c0_38 = arith.constant 0 : index
    %c0_39 = arith.constant 0 : index
    %76 = vector.load %arg9[%c0_38, %c0_39] : memref<16x4xf32, #tpu.memory_space<vmem>>, vector<16x4xf32>
    %cst_40 = arith.constant dense<0.000000e+00> : vector<16x4xf32>
    %77 = tpu.matmul %75, %76, %cst_40 {dimension_numbers = #tpu.dot_dimension_numbers<[1], [0], [0], [1], [0, 0, 1, 1], [], []>} : vector<16x16xf32>, vector<16x4xf32>, vector<16x4xf32> -> vector<16x4xf32>
    %c0_41 = arith.constant 0 : index
    %c0_42 = arith.constant 0 : index
    %78 = vector.load %arg10[%c0_41, %c0_42] : memref<1x4xf32, #tpu.memory_space<vmem>>, vector<1x4xf32>
    %79 = vector.broadcast %78 : vector<1x4xf32> to vector<16x4xf32>
    %80 = arith.addf %77, %79 : vector<16x4xf32>
    %81 = vector.extract_strided_slice %80 {offsets = [0, 0], sizes = [8, 4], strides = [1, 1]} : vector<16x4xf32> to vector<8x4xf32>
    %82 = vector.broadcast %52 : vector<8x1xf32> to vector<8x4xf32>
    %83 = arith.mulf %82, %81 : vector<8x4xf32>
    %cst_43 = arith.constant dense<0.000000e+00> : vector<8x4xf32>
    %84 = tpu.matmul %54, %83, %cst_43 {dimension_numbers = #tpu.dot_dimension_numbers<[1], [0], [0], [1], [0, 0, 1, 1], [], []>} : vector<8x8xf32>, vector<8x4xf32>, vector<8x4xf32> -> vector<8x4xf32>
    %cst_44 = arith.constant 0.000000e+00 : f32
    %85 = vector.broadcast %cst_44 : f32 to vector<8x4xf32>
    %86 = arith.maximumf %84, %85 : vector<8x4xf32>
    %c0_45 = arith.constant 0 : index
    %c0_46 = arith.constant 0 : index
    %87 = vector.load %arg11[%c0_45, %c0_46] : memref<16x4xf32, #tpu.memory_space<vmem>>, vector<8x4xf32>
    tpu.vector_store %arg11[%c0_45, %c0_46], %86 {strides = array<i32>} : memref<16x4xf32, #tpu.memory_space<vmem>>, vector<8x4xf32>,
    %88 = vector.extract_strided_slice %80 {offsets = [8, 0], sizes = [8, 4], strides = [1, 1]} : vector<16x4xf32> to vector<8x4xf32>
    %89 = vector.broadcast %52 : vector<8x1xf32> to vector<8x4xf32>
    %90 = arith.mulf %89, %88 : vector<8x4xf32>
    %cst_47 = arith.constant dense<0.000000e+00> : vector<8x4xf32>
    %91 = tpu.matmul %54, %90, %cst_47 {dimension_numbers = #tpu.dot_dimension_numbers<[1], [0], [0], [1], [0, 0, 1, 1], [], []>} : vector<8x8xf32>, vector<8x4xf32>, vector<8x4xf32> -> vector<8x4xf32>
    %cst_48 = arith.constant 0.000000e+00 : f32
    %92 = vector.broadcast %cst_48 : f32 to vector<8x4xf32>
    %93 = arith.maximumf %91, %92 : vector<8x4xf32>
    %c8_49 = arith.constant 8 : index
    %c0_50 = arith.constant 0 : index
    %94 = vector.load %arg11[%c8_49, %c0_50] : memref<16x4xf32, #tpu.memory_space<vmem>>, vector<8x4xf32>
    tpu.vector_store %arg11[%c8_49, %c0_50], %93 {strides = array<i32>} : memref<16x4xf32, #tpu.memory_space<vmem>>, vector<8x4xf32>,
    return
  }
}

</mosaic_0001>

<bundles_post_ra>
// kernel: tpu_custom_call.1
= control target key start
LH: loop header
LB: loop body
LE: loop exit
PB: predicated region body
PF: predicated region fallthrough
CT: control target
= control target key end

     0   :  { %16 = vsyncpa [#allocation4], 0  ;;  %s1895_s0 = inlined_call_operand.hbm [shape: f32[8,32], index: 0, kind: input, shape index: {}]   ;;  %s1896_s1 = inlined_call_operand.hbm [shape: f32[8,32], index: 1, kind: input, shape index: {}]   ;;  %s1897_s2 = inlined_call_operand.vmem [shape: f32[32,32], index: 2, kind: input, shape index: {}]   ;;  %s1898_s3 = inlined_call_operand.vmem [shape: f32[1,32], index: 3, kind: input, shape index: {}]   ;;  %s1899_s4 = inlined_call_operand.vmem [shape: f32[32,32], index: 4, kind: input, shape index: {}]   ;;  %s1900_s5 = inlined_call_operand.vmem [shape: f32[1,32], index: 5, kind: input, shape index: {}]   ;;  %s1901_s6 = inlined_call_operand.hbm [shape: f32[16,32], index: 6, kind: input, shape index: {}]   ;;  %s1902_s7 = inlined_call_operand.vmem [shape: f32[32,16], index: 7, kind: input, shape index: {}]   ;;  %s1903_s8 = inlined_call_operand.vmem [shape: f32[1,16], index: 8, kind: input, shape index: {}]   ;;  %s1904_s9 = inlined_call_operand.vmem [shape: f32[16,4], index: 9, kind: input, shape index: {}]   ;;  %s1905_s10 = inlined_call_operand.vmem [shape: f32[1,4], index: 10, kind: input, shape index: {}]   ;;  %s1906_s11 = inlined_call_operand.vmem [shape: f32[16,4], index: 11, kind: output, shape index: {}]  }
   0x1   :  { %17 = vsyncpa [#allocation6], 0  ;;  %s1578_s17 = smov [#allocation5]   ;;  %s1579_s19 = smov [#allocation3]  }
   0x2   :  { %s34_s18 = sshll.u32 %s1578_s17, 4  ;;  %s24_s20 = sshll.u32 %s1579_s19, 4  ;;  %s35_s18 = int_to_ptr.vmem [resolvable:$true] %s34_s18  ;;  %s25_s20 = int_to_ptr.vmem [resolvable:$true] %s24_s20 }
   0x3   :  { %s1508_s23 = scalar_lea.hbm %s1896_s1, 128 }
   0x4   :  { %p1509_p0 = scmp.ne.s32.totalorder %s1896_s1, %s1508_s23  ;;  %p1512_p1 = scmp.lt.u32.totalorder %s1508_s23, %s1896_s1 }
   0x6   :  { %p1514_p2 = pnand %p1512_p1, %p1509_p0 }
   0x8   :  { %1517 = shalt.err (!%p1514_p2)
}
   0x9   :  { %s1518_s28 = scalar_lea.vmem %s35_s18, 128  ;;  %p1523_p4 = scmp.lt.s32.totalorder %s35_s18, %s35_s18 }
   0xa   :  { %p1519_p3 = scmp.ne.s32.totalorder %s35_s18, %s1518_s28  ;;  %p1524_p5 = scmp.lt.s32.totalorder %s1518_s28, %s1518_s28 }
   0xc   :  { %p1525_p6 = por %p1524_p5, %p1523_p4 }
   0xe   :  { %p1526_p7 = pnand %p1525_p6, %p1519_p3 }
  0x10   :  { %1529 = shalt.err (!%p1526_p7)
}
  0x11   :  { %37 = dma.hbm_to_vmem [thread:$0]  %s1896_s1, 128, %s35_s18, [#allocation6]  }
  0x12   :  { %s1530_s14 = scalar_lea.hbm %s1895_s0, 128 }
  0x13   :  { %p1531_p8 = scmp.ne.s32.totalorder %s1895_s0, %s1530_s14  ;;  %p1534_p9 = scmp.lt.u32.totalorder %s1530_s14, %s1895_s0 }
  0x15   :  { %p1536_p10 = pnand %p1534_p9, %p1531_p8 }
  0x17   :  { %1539 = shalt.err (!%p1536_p10)
}
  0x18   :  { %s1540_s21 = scalar_lea.vmem %s25_s20, 128  ;;  %p1545_p12 = scmp.lt.s32.totalorder %s25_s20, %s25_s20 }
  0x19   :  { %p1541_p11 = scmp.ne.s32.totalorder %s25_s20, %s1540_s21  ;;  %p1546_p13 = scmp.lt.s32.totalorder %s1540_s21, %s1540_s21 }
  0x1b   :  { %p1547_p0 = por %p1546_p13, %p1545_p12 }
  0x1d   :  { %p1548_p1 = pnand %p1547_p0, %p1541_p11 }
  0x1f   :  { %1551 = shalt.err (!%p1548_p1)
}
  0x20   :  { %27 = dma.hbm_to_vmem [thread:$0]  %s1895_s0, 128, %s25_s20, [#allocation4]  }
  0x21   :  { %s1580_s22 = smov [#allocation7]   ;;  %s1552_s26 = scalar_lea.hbm %s1901_s6, 256 }
  0x22   :  { %s51_s23 = sshll.u32 %s1580_s22, 4  ;;  %p1553_p2 = scmp.ne.s32.totalorder %s1901_s6, %s1552_s26  ;;  %s52_s23 = int_to_ptr.vmem [resolvable:$true] %s51_s23 }
  0x23   :  { %p1556_p3 = scmp.lt.u32.totalorder %s1552_s26, %s1901_s6 }
  0x25   :  { %p1558_p4 = pnand %p1556_p3, %p1553_p2 }
  0x27   :  { %1561 = shalt.err (!%p1558_p4)
}
  0x28   :  { %s1562_s12 = scalar_lea.vmem %s52_s23, 256  ;;  %p1567_p6 = scmp.lt.s32.totalorder %s52_s23, %s52_s23 }
  0x29   :  { %p1563_p5 = scmp.ne.s32.totalorder %s52_s23, %s1562_s12  ;;  %p1568_p7 = scmp.lt.s32.totalorder %s1562_s12, %s1562_s12 }
  0x2b   :  { %p1569_p8 = por %p1568_p7, %p1567_p6 }
  0x2d   :  { %p1570_p9 = pnand %p1569_p8, %p1563_p5 }
  0x2f   :  { %1573 = shalt.err (!%p1570_p9)
}
  0x30   :  { %s1581_s0 = smov 128   ;;  %s1582_s20 = smov 8  }
  0x31   :  { %57 = dma.hbm_to_vmem [thread:$0]  %s1901_s6, 256, %s52_s23, [#allocation6], %s1581_s0, %s1581_s0, %s1582_s20  }
  0x32   :  { %1574 = dma.done.wait [#allocation4], 128  }
  0x33   :  { %1575 = vsyncadd [#allocation4], 4294967168 }
  0x34   :  { %1576 = dma.done.wait [#allocation6], 384  }
  0x35   :  { %1577 = vsyncadd [#allocation6], 4294966912  ;;  %v1583_v0 = vmov 0.0|0.0   ;;  %vm1584_vm0 = vmmov 0   ;;  %v1585_v1 = vmov 0.0   ;;  %v164_v2 = vld [vmem:[%s1899_s4] sm:$0xff]  ;;  %v329_v16 = vlaneseq }
  0x36   :  { %1470 = vmatprep.subr.bf16.mxu1 %v1583_v0  ;;  %1464 = vmatprep.subr.bf16.mxu0 %v1583_v0  ;;  %v165_v3 = vld [vmem:[%s1899_s4 + $0x8] sm:$0xff]  ;;  %v76_v4 = vld [vmem:[%s1897_s2] sm:$0xff]  ;;  %v166_v7 = vld [vmem:[%s1899_s4 + $0x10] sm:$0xff]  ;;  %vm87_vm1 = vcmask 261120   ;;  %v1586_v44 = vmov 0   ;;  %vm520_vm11 = vcmask 64512  }
  0x37   :  { %1418 = vmatprep.mubr.msk.f32.mxu1 %vm1584_vm0, %v1585_v1  ;;  %1407 = vmatprep.mubr.msk.f32.mxu0 %vm1584_vm0, %v1585_v1  ;;  %v1471_v5 = vpack.c.bf16 %v165_v3, %v164_v2  ;;  %v77_v6 = vld [vmem:[%s1897_s2 + $0x8] sm:$0xff]  ;;  %v167_v8 = vld [vmem:[%s1899_s4 + $0x18] sm:$0xff]  ;;  %v78_v10 = vld [vmem:[%s1897_s2 + $0x10] sm:$0xff]  ;;  %v1717_v17 = vshrl.u32 %v329_v16, 7  ;;  %v1719_v18 = vand.u32 127, %v329_v16 }
  0x38   :  { %v1465_v9 = vpack.c.bf16 %v77_v6, %v76_v4  ;;  %v79_v11 = vld [vmem:[%s1897_s2 + $0x18] sm:$0xff]  ;;  %v1474_v12 = vpack.c.bf16 %v167_v8, %v166_v7  ;;  %v75_v15 = vld [vmem:[#allocation3] sm:$0xff]  ;;  %v1355_v22 = vld [vmem:[%s1900_s5] ss:$0 sm:$0xff]  ;;  %1499 = vset.pattern.permute.xlu1 %v1586_v44  ;;  %1498 = vset.pattern.permute.xlu0 %v1586_v44  ;;  %v1587_v61 = vmov 1966171168  }
  0x39   :  { %1472 = vmatpush3.bf16.msra.mxu1 %v1471_v5  ;;  %v1468_v13 = vpack.c.bf16 %v79_v11, %v78_v10  ;;  %v163_v14 = vld [vmem:[#allocation5] sm:$0xff]  ;;  %v338_v19 = vsub.s32 1, %v1717_v17  ;;  %vm705_vm2 = vcmp.eq.s32.totalorder %v1717_v17, %v1719_v18  ;;  %v1353_v23 = vld [vmem:[%s1898_s3] ss:$0 sm:$0xff]  ;;  %v345_v34 = vsub.s32 2, %v1717_v17 }
  0x3a   :  { %1466 = vmatpush3.bf16.msra.mxu0 %v1465_v9  ;;  %1473 = vmatprep.subr.bf16.mxu1 %v1583_v0  ;;  %v1725_v20 = vsel %vm705_vm2, 1.0, %v1585_v1  ;;  %v352_v36 = vsub.s32 3, %v1717_v17  ;;  %v359_v38 = vsub.s32 4, %v1717_v17  ;;  %v366_v40 = vsub.s32 5, %v1717_v17 }
  0x3b   :  { %1467 = vmatprep.subr.bf16.mxu0 %v1583_v0  ;;  %v718_v21 = vrot.slane %v1725_v20, %v338_v19  ;;  %v725_v35 = vrot.slane %v1725_v20, %v345_v34  ;;  %v1747_v41 = vsub.s32 0, %v1717_v17  ;;  %v380_v56 = vsub.s32 7, %v1717_v17 }
  0x3c   :  { %v732_v37 = vrot.slane %v1725_v20, %v352_v36  ;;  %v739_v39 = vrot.slane %v1725_v20, %v359_v38  ;;  %v746_v42 = vrot.slane %v1725_v20, %v366_v40  ;;  %v373_v57 = vsub.s32 6, %v1717_v17 }
  0x3d   :  { %1475 = vmatpush3.bf16.msra.mxu1 %v1474_v12  ;;  %720 = vbcast.lane.b32.xlu0 %v718_v21, 256  ;;  %v711_v43 = vrot.slane %v1725_v20, %v1747_v41  ;;  %v388_v62 = vunpack.c.l.s4 %v1587_v61  ;;  %vm1777_vm3 = vcmp.lt.s32.totalorder %v1719_v18, %v1717_v17 }
  0x3e   :  { %1469 = vmatpush3.bf16.msra.mxu0 %v1468_v13 }
  0x3f   :  { %1421 = vmatprep.subr.mxu0 %v1585_v1  ;;  %713 = vbcast.lane.b32.xlu1 %v711_v43, 256  ;;  %v389_v0 = vunpack.c.0.s8 %v388_v62 }
  0x40   :  { %1419 = vmatmul.mubr.msk.f32.vlgmr.msra.gmra.mrb[0].mxu1 %vm87_vm1, %v163_v14 }
  0x41   :  { %1408 = vmatmul.mubr.msk.f32.vlgmr.msra.gmra.mrb[0].mxu0 %vm87_vm1, %v75_v15  ;;  %727 = vbcast.lane.b32.xlu0 %v725_v35, 256  ;;  %v392_v3 = vsub.s32 %v389_v0, %v1717_v17 }
  0x42   :  { %1423 = vmatprep.mubr.msk.f32.mxu0 %vm1584_vm0, %v1585_v1 }
  0x45   :  { %734 = vbcast.lane.b32.xlu0 %v732_v37, 256 }
  0x49   :  { %741 = vbcast.lane.b32.xlu0 %v739_v39, 256 }
  0x4d   :  { %748 = vbcast.lane.b32.xlu0 %v746_v42, 256 }
  0xaf   :  { %v1761_v60 = vpop.permute.xlu0 %720 }
  0xb1   :  { %v1772_v10 = vpop.permute.xlu1 %713 }
  0xb3   :  { %v1763_v63 = vpop.permute.xlu0 %727 }
  0xb7   :  { %v1765_v2 = vpop.permute.xlu0 %734 }
  0xbb   :  { %v1768_v5 = vpop.permute.xlu0 %741 }
  0xbf   :  { %v1770_v9 = vpop.permute.xlu0 %748 }
 0x113   :  { %v244_v24 = vpop.f32.mrb[0].mxu1 }
 0x114   :  { %v245_v25 = vadd.f32 %v1355_v22, %v244_v24  ;;  %v1420_v26 = vpop.f32.mrb[1].mxu1  ;;  %v157_v27 = vpop.f32.mrb[0].mxu0 }
 0x115   :  { %v158_v28 = vadd.f32 %v1353_v23, %v157_v27  ;;  %v1409_v29 = vpop.f32.mrb[1].mxu0 }
 0x116   :  { %v248_v30 = vmul.f32 3.0, %v245_v25 }
 0x117   :  { %v161_v31 = vmul.f32 3.0, %v158_v28 }
 0x118   :  { %1500 = vtanh.f32 %v248_v30 }
 0x119   :  { %1502 = vtanh.f32 %v161_v31 }
 0x122   :  { %v1501_v32 = vpop.eup %1500 }
 0x123   :  { %v1503_v33 = vpop.eup %1502  ;;  %1422 = vmatpush3.xpose.msk.msra.mxu0 %vm87_vm1, %v1501_v32 }
 0x124   :  { %1437 = vmatprep.subr.mxu0 %v1585_v1 }
 0x126   :  { %1424 = vmatmul.mubr.msk.f32.vlgmr.msra.gmra.mrb[2].mxu0 %vm87_vm1, %v1503_v33 }
 0x127   :  { %1439 = vmatprep.mubr.msk.f32.mxu0 %vm1584_vm0, %v1585_v1 }
 0x1f9   :  { %v322_v45 = vpop.f32.mrb[2].mxu0 }
 0x1fa   :  { %v326_v46 = vmul.f32 3.0, %v322_v45  ;;  %v1425_v47 = vpop.f32.mrb[3].mxu0 }
 0x1fc   :  { %1504 = vtanh.f32 %v326_v46 }
 0x206   :  { %v1505_v48 = vpop.eup %1504 }
 0x207   :  { %v328_v49 = vmax.f32 %v1505_v48, 0.0 }
 0x209   :  { %v346_v50 = vrot.slane %v328_v49, %v345_v34  ;;  %v332_v51 = vrot.slane %v328_v49, %v1747_v41  ;;  %v353_v52 = vrot.slane %v328_v49, %v352_v36  ;;  %v339_v53 = vrot.slane %v328_v49, %v338_v19 }
 0x20a   :  { %v367_v54 = vrot.slane %v328_v49, %v366_v40  ;;  %v360_v55 = vrot.slane %v328_v49, %v359_v38  ;;  %v381_v58 = vrot.slane %v328_v49, %v380_v56  ;;  %v374_v59 = vrot.slane %v328_v49, %v373_v57 }
 0x20b   :  { %348 = vbcast.lane.b32.xlu1 %v346_v50, 256  ;;  %334 = vbcast.lane.b32.xlu0 %v332_v51, 256  ;;  %v393_v4 = vrot.slane %v328_v49, %v392_v3  ;;  %v386_v8 = vcombine.high %v328_v49, %v328_v49 }
 0x20d   :  { %v409_v6 = vrot.slane %v393_v4, %v392_v3  ;;  %v401_v7 = vcombine.high %v393_v4, %v393_v4  ;;  %v400_v13 = vrot.slane %v386_v8, %v392_v3 }
 0x20f   :  { %355 = vbcast.lane.b32.xlu1 %v353_v52, 256  ;;  %341 = vbcast.lane.b32.xlu0 %v339_v53, 256  ;;  %v431_v11 = vcombine.high %v409_v6, %v409_v6  ;;  %v423_v12 = vrot.slane %v401_v7, %v392_v3  ;;  %v442_v16 = vrot.slane %v409_v6, %v1747_v41 }
 0x210   :  { %v402_v23 = vcombine.high %v400_v13, %v400_v13  ;;  %v416_v26 = vrot.slane %v400_v13, %v392_v3 }
 0x211   :  { %v450_v14 = vrot.slane %v431_v11, %v1747_v41  ;;  %v433_v19 = vcombine.high %v423_v12, %v423_v12  ;;  %v446_v25 = vrot.slane %v423_v12, %v1747_v41 }
 0x212   :  { %v430_v30 = vrot.slane %v402_v23, %v392_v3  ;;  %v458_v33 = vrot.slane %v416_v26, %v1747_v41  ;;  %v432_v40 = vcombine.high %v416_v26, %v416_v26 }
 0x213   :  { %369 = vbcast.lane.b32.xlu1 %v367_v54, 256  ;;  %362 = vbcast.lane.b32.xlu0 %v360_v55, 256  ;;  %v454_v24 = vrot.slane %v433_v19, %v1747_v41 }
 0x214   :  { %v462_v39 = vrot.slane %v430_v30, %v1747_v41 }
 0x217   :  { %383 = vbcast.lane.b32.xlu1 %v381_v58, 256  ;;  %376 = vbcast.lane.b32.xlu0 %v374_v59, 256 }
 0x21b   :  { %638 = vbcast.lane.b32.xlu1 %v332_v51, 256  ;;  %645 = vbcast.lane.b32.xlu0 %v339_v53, 256  ;;  %v466_v51 = vrot.slane %v432_v40, %v1747_v41  ;;  %v867_v40 = vld [vmem:[%s1902_s7 + $0x8] sm:$0xff] }
 0x21f   :  { %652 = vbcast.lane.b32.xlu1 %v346_v50, 256  ;;  %v434_v50 = vcombine.high %v430_v30, %v430_v30 }
 0x221   :  { %v470_v62 = vrot.slane %v434_v50, %v1747_v41 }
 0x223   :  { %659 = vbcast.lane.b32.xlu1 %v353_v52, 256 }
 0x227   :  { %666 = vbcast.lane.b32.xlu1 %v360_v55, 256 }
 0x22b   :  { %673 = vbcast.lane.b32.xlu1 %v367_v54, 256 }
 0x22f   :  { %680 = vbcast.lane.b32.xlu1 %v374_v59, 256 }
 0x233   :  { %687 = vbcast.lane.b32.xlu1 %v381_v58, 256 }
 0x27d   :  { %v349_v21 = vpop.permute.xlu1 %348  ;;  %v335_v22 = vpop.permute.xlu0 %334 }
 0x27e   :  { %vm481_vm4 = vcmp.gt.f32.partialorder %v450_v14, %v349_v21  ;;  %vm489_vm5 = vcmp.eq.f32.partialorder %v450_v14, %v349_v21  ;;  %vm487_vm6 = vcmp.eq.f32.partialorder %v442_v16, %v335_v22  ;;  %vm479_vm8 = vcmp.gt.f32.partialorder %v442_v16, %v335_v22 }
 0x27f   :  { %vm498_vm7 = vmand %vm489_vm5, %vm1777_vm3 }
 0x280   :  { %vm506_vm9 = vmor %vm481_vm4, %vm498_vm7 }
 0x281   :  { %v514_v27 = vsel %vm506_vm9, 1, %v1586_v44  ;;  %vm496_vm10 = vmand %vm487_vm6, %vm1777_vm3  ;;  %v356_v28 = vpop.permute.xlu1 %355  ;;  %v342_v29 = vpop.permute.xlu0 %341 }
 0x282   :  { %vm504_vm12 = vmor %vm479_vm8, %vm496_vm10  ;;  %vm482_vm13 = vcmp.gt.f32.partialorder %v454_v24, %v356_v28  ;;  %vm490_vm14 = vcmp.eq.f32.partialorder %v454_v24, %v356_v28  ;;  %vm488_vm15 = vcmp.eq.f32.partialorder %v446_v25, %v342_v29  ;;  %vm480_vm4 = vcmp.gt.f32.partialorder %v446_v25, %v342_v29 }
 0x283   :  { %v512_v31 = vsel %vm504_vm12, 1, %v1586_v44  ;;  %vm499_vm2 = vmand %vm490_vm14, %vm1777_vm3  ;;  %v547_v35 = vsel %vm520_vm11, %v514_v27, 0 }
 0x284   :  { %vm1792_vm5 = vmor %vm482_vm13, %vm499_vm2  ;;  %v521_v34 = vsel %vm520_vm11, %v512_v31, 0  ;;  %v549_v45 = vshrl.u32 %v547_v35, 16  ;;  %v548_v0 = vand.u32 65535, %v547_v35 }
 0x285   :  { %vm497_vm6 = vmand %vm488_vm15, %vm1777_vm3  ;;  %v370_v36 = vpop.permute.xlu1 %369  ;;  %v363_v37 = vpop.permute.xlu0 %362  ;;  %v523_v38 = vshrl.u32 %v521_v34, 16  ;;  %v515_v47 = vsel %vm1792_vm5, 1, %v1586_v44  ;;  %v522_v52 = vand.u32 65535, %v521_v34 }
 0x286   :  { %vm505_vm7 = vmor %vm480_vm4, %vm497_vm6  ;;  %vm491_vm8 = vcmp.eq.f32.partialorder %v458_v33, %v363_v37  ;;  %vm483_vm9 = vcmp.gt.f32.partialorder %v458_v33, %v363_v37  ;;  %vm492_vm10 = vcmp.eq.f32.partialorder %v462_v39, %v370_v36  ;;  %vm484_vm14 = vcmp.gt.f32.partialorder %v462_v39, %v370_v36  ;;  %v866_v39 = vld [vmem:[%s1902_s7] sm:$0xff] }
 0x287   :  { %v513_v42 = vsel %vm505_vm7, 1, %v1586_v44  ;;  %v525_v43 = vcvt.s32.f32 %v523_v38  ;;  %vm500_vm12 = vmand %vm491_vm8, %vm1777_vm3  ;;  %v551_v53 = vcvt.s32.f32 %v549_v45  ;;  %v560_v58 = vsel %vm520_vm11, %v515_v47, 0  ;;  %v864_v45 = vld [vmem:[#allocation7] sm:$0xff] }
 0x288   :  { %v534_v46 = vsel %vm520_vm11, %v513_v42, 0  ;;  %vm508_vm13 = vmor %vm483_vm9, %vm500_vm12  ;;  %v524_v3 = vcvt.s32.f32 %v522_v52  ;;  %v562_v6 = vshrl.u32 %v560_v58, 16  ;;  %v550_v11 = vcvt.s32.f32 %v548_v0  ;;  %v868_v42 = vld [vmem:[%s1902_s7 + $0x10] sm:$0xff]  ;;  %1434 = vmatprep.mubr.msk.f32.mxu1 %vm87_vm1, %v864_v45 }
 0x289   :  { %528 = vadd.xlane.f32.xlu0 %v525_v43  ;;  %v377_v48 = vpop.permute.xlu0 %376  ;;  %v536_v49 = vshrl.u32 %v534_v46, 16  ;;  %vm501_vm15 = vmand %vm492_vm10, %vm1777_vm3  ;;  %v535_v55 = vand.u32 65535, %v534_v46  ;;  %v516_v59 = vsel %vm508_vm13, 1, %v1586_v44  ;;  %v384_v61 = vpop.permute.xlu1 %383  ;;  %v561_v12 = vand.u32 65535, %v560_v58 }
 0x28a   :  { %vm493_vm2 = vcmp.eq.f32.partialorder %v466_v51, %v377_v48  ;;  %vm509_vm4 = vmor %vm484_vm14, %vm501_vm15  ;;  %vm485_vm5 = vcmp.gt.f32.partialorder %v466_v51, %v377_v48  ;;  %vm494_vm7 = vcmp.eq.f32.partialorder %v470_v62, %v384_v61  ;;  %v573_v7 = vsel %vm520_vm11, %v516_v59, 0 }
 0x28b   :  { %v538_v54 = vcvt.s32.f32 %v536_v49  ;;  %vm502_vm6 = vmand %vm493_vm2, %vm1777_vm3  ;;  %v537_v4 = vcvt.s32.f32 %v535_v55  ;;  %v517_v8 = vsel %vm509_vm4, 1, %v1586_v44  ;;  %vm486_vm9 = vcmp.gt.f32.partialorder %v470_v62, %v384_v61 }
 0x28c   :  { %vm510_vm8 = vmor %vm485_vm5, %vm502_vm6  ;;  %v564_v41 = vcvt.s32.f32 %v562_v6  ;;  %v575_v13 = vshrl.u32 %v573_v7, 16  ;;  %v586_v14 = vsel %vm520_vm11, %v517_v8, 0  ;;  %v563_v19 = vcvt.s32.f32 %v561_v12 }
 0x28d   :  { %554 = vadd.xlane.f32.xlu0 %v551_v53  ;;  %541 = vadd.xlane.f32.xlu1 %v538_v54  ;;  %vm503_vm10 = vmand %vm494_vm7, %vm1777_vm3  ;;  %v518_v16 = vsel %vm510_vm8, 1, %v1586_v44  ;;  %v588_v22 = vshrl.u32 %v586_v14, 16  ;;  %v574_v23 = vand.u32 65535, %v573_v7  ;;  %v587_v27 = vand.u32 65535, %v586_v14  ;;  %v639_v46 = vpop.permute.xlu1 %638  ;;  %v646_v52 = vpop.permute.xlu0 %645 }
 0x28e   :  { %vm511_vm12 = vmor %vm486_vm9, %vm503_vm10  ;;  %v577_v21 = vcvt.s32.f32 %v575_v13  ;;  %v599_v24 = vsel %vm520_vm11, %v518_v16, 0  ;;  %v760_v37 = vrot.slane %v1725_v20, %v380_v56  ;;  %v753_v38 = vrot.slane %v1725_v20, %v373_v57  ;;  %v869_v56 = vld [vmem:[%s1902_s7 + $0x18] sm:$0xff]  ;;  %v865_v57 = vld [vmem:[#allocation7 + $0x8] sm:$0xff] }
 0x28f   :  { %v519_v25 = vsel %vm511_vm12, 1, %v1586_v44  ;;  %v590_v15 = vcvt.s32.f32 %v588_v22  ;;  %v576_v26 = vcvt.s32.f32 %v574_v23  ;;  %v601_v28 = vshrl.u32 %v599_v24, 16 }
 0x290   :  { %v612_v29 = vsel %vm520_vm11, %v519_v25, 0  ;;  %v589_v30 = vcvt.s32.f32 %v587_v27  ;;  %v600_v33 = vand.u32 65535, %v599_v24  ;;  %v1476_v43 = vpack.c.bf16 %v867_v40, %v866_v39 }
 0x291   :  { %526 = vadd.xlane.f32.xlu0 %v524_v3  ;;  %539 = vadd.xlane.f32.xlu1 %v537_v4  ;;  %v603_v31 = vcvt.s32.f32 %v601_v28  ;;  %v614_v32 = vshrl.u32 %v612_v29, 16  ;;  %v613_v36 = vand.u32 65535, %v612_v29  ;;  %v1480_v20 = vpack.c.bf16 %v869_v56, %v868_v42  ;;  %v653_v47 = vpop.permute.xlu1 %652 }
 0x292   :  { %v602_v35 = vcvt.s32.f32 %v600_v33  ;;  %1477 = vmatprep.subr.bf16.mxu1 %v1476_v43  ;;  %vm844_vm6 = vcmask 1041409   ;;  %vm846_vm7 = vcmask 1042434   ;;  %vm848_vm8 = vcmask 1043459  }
 0x293   :  { %v616_v34 = vcvt.s32.f32 %v614_v32  ;;  %v615_v44 = vcvt.s32.f32 %v613_v36  ;;  %1479 = vmatpush3.bf16.msra.mxu1 %v1476_v43  ;;  %vm850_vm9 = vcmask 1044484   ;;  %vm852_vm10 = vcmask 1045509  }
 0x294   :  { %1481 = vmatprep.subr.bf16.mxu1 %v1480_v20  ;;  %vm854_vm12 = vcmask 1046534  }
 0x295   :  { %567 = vadd.xlane.f32.xlu0 %v564_v41  ;;  %552 = vadd.xlane.f32.xlu1 %v550_v11  ;;  %v660_v48 = vpop.permute.xlu1 %659 }
 0x297   :  { %1483 = vmatpush3.bf16.msra.mxu1 %v1480_v20 }
 0x299   :  { %565 = vadd.xlane.f32.xlu1 %v563_v19  ;;  %580 = vadd.xlane.f32.xlu0 %v577_v21  ;;  %v667_v49 = vpop.permute.xlu1 %666 }
 0x29a   :  { %1435 = vmatmul.mubr.msk.f32.vlgmr.msra.gmra.mrb[2].mxu1 %vm87_vm1, %v865_v57 }
 0x29d   :  { %593 = vadd.xlane.f32.xlu0 %v590_v15  ;;  %578 = vadd.xlane.f32.xlu1 %v576_v26  ;;  %v1846_v50 = vpop.permute.xlu1 %673 }
 0x2a1   :  { %591 = vadd.xlane.f32.xlu1 %v589_v30  ;;  %606 = vadd.xlane.f32.xlu0 %v603_v31  ;;  %v1848_v51 = vpop.permute.xlu1 %680 }
 0x2a5   :  { %619 = vadd.xlane.f32.xlu0 %v616_v34  ;;  %604 = vadd.xlane.f32.xlu1 %v602_v35  ;;  %v1850_v53 = vpop.permute.xlu1 %687 }
 0x2a9   :  { %617 = vadd.xlane.f32.xlu0 %v615_v44 }
 0x2b6   :  { %762 = vbcast.lane.b32.xlu1 %v760_v37, 256 }
 0x2bf   :  { %755 = vbcast.lane.b32.xlu0 %v753_v38, 256 }
 0x316   :  { %v529_v54 = vpop.xlane.xlu0 %528 }
 0x317   :  { %v531_v59 = vcvt.f32.s32 %v529_v54 }
 0x319   :  { %v532_v4 = vshll.u32 %v531_v59, 16 }
 0x31a   :  { %v542_v55 = vpop.xlane.xlu1 %541  ;;  %v555_v58 = vpop.xlane.xlu0 %554 }
 0x31b   :  { %v544_v61 = vcvt.f32.s32 %v542_v55  ;;  %v557_v62 = vcvt.f32.s32 %v555_v58 }
 0x31d   :  { %v545_v6 = vshll.u32 %v544_v61, 16  ;;  %v558_v12 = vshll.u32 %v557_v62, 16 }
 0x31e   :  { %v540_v0 = vpop.xlane.xlu1 %539  ;;  %v527_v3 = vpop.xlane.xlu0 %526 }
 0x31f   :  { %v543_v7 = vcvt.f32.s32 %v540_v0  ;;  %v530_v8 = vcvt.f32.s32 %v527_v3 }
 0x321   :  { %v546_v11 = vadd.s32 %v545_v6, %v543_v7  ;;  %v533_v41 = vadd.s32 %v532_v4, %v530_v8 }
 0x322   :  { %v553_v13 = vpop.xlane.xlu1 %552  ;;  %v568_v14 = vpop.xlane.xlu0 %567 }
 0x323   :  { %vm626_vm1 = vcmp.lt.s32.totalorder %v546_v11, 3  ;;  %vm625_vm3 = vcmp.lt.s32.totalorder %v533_v41, 3  ;;  %v556_v16 = vcvt.f32.s32 %v553_v13  ;;  %v570_v19 = vcvt.f32.s32 %v568_v14 }
 0x324   :  { %v698_v21 = vsel %vm626_vm1, %v646_v52, 0.0  ;;  %v697_v22 = vsel %vm625_vm3, %v639_v46, 0.0  ;;  %vm856_vm1 = vcmask 1047559   ;;  %vm1033_vm3 = vcmask 130048  }
 0x325   :  { %v559_v23 = vadd.s32 %v558_v12, %v556_v16  ;;  %v773_v24 = vadd.f32 %v1761_v60, %v698_v21  ;;  %v772_v25 = vadd.f32 %v1772_v10, %v697_v22  ;;  %v571_v27 = vshll.u32 %v570_v19, 16 }
 0x326   :  { %v566_v15 = vpop.xlane.xlu1 %565  ;;  %v581_v26 = vpop.xlane.xlu0 %580 }
 0x327   :  { %vm627_vm13 = vcmp.lt.s32.totalorder %v559_v23, 3  ;;  %v569_v28 = vcvt.f32.s32 %v566_v15  ;;  %v583_v29 = vcvt.f32.s32 %v581_v26  ;;  %792 = vperm.xlu1 %1499, %v773_v24   ;;  %789 = vperm.xlu0 %1498, %v772_v25  }
 0x328   :  { %v699_v30 = vsel %vm627_vm13, %v653_v47, 0.0  ;;  %vm1272_vm13 = vcmask 31744  }
 0x329   :  { %v572_v31 = vadd.s32 %v571_v27, %v569_v28  ;;  %v774_v32 = vadd.f32 %v1763_v63, %v699_v30  ;;  %v584_v35 = vshll.u32 %v583_v29, 16 }
 0x32a   :  { %v579_v33 = vpop.xlane.xlu1 %578  ;;  %v594_v34 = vpop.xlane.xlu0 %593 }
 0x32b   :  { %vm628_vm14 = vcmp.lt.s32.totalorder %v572_v31, 3  ;;  %v582_v36 = vcvt.f32.s32 %v579_v33  ;;  %v596_v60 = vcvt.f32.s32 %v594_v34  ;;  %795 = vperm.xlu1 %1499, %v774_v32   ;;  %v1359_v32 = vld [vmem:[%s1903_s8] ss:$0 sm:$0xff] }
 0x32c   :  { %v700_v10 = vsel %vm628_vm14, %v660_v48, 0.0 }
 0x32d   :  { %v585_v44 = vadd.s32 %v584_v35, %v582_v36  ;;  %v775_v37 = vadd.f32 %v1765_v2, %v700_v10  ;;  %v597_v40 = vshll.u32 %v596_v60, 16 }
 0x32e   :  { %v592_v38 = vpop.xlane.xlu1 %591  ;;  %v607_v39 = vpop.xlane.xlu0 %606 }
 0x32f   :  { %vm629_vm15 = vcmp.lt.s32.totalorder %v585_v44, 3  ;;  %v595_v42 = vcvt.f32.s32 %v592_v38  ;;  %v609_v43 = vcvt.f32.s32 %v607_v39  ;;  %798 = vperm.xlu0 %1498, %v775_v37   ;;  %v1110_v44 = vld [vmem:[%s1904_s9] sm:$0xff]  ;;  %v1111_v37 = vld [vmem:[%s1904_s9 + $0x8] sm:$0xff] }
 0x330   :  { %v701_v56 = vsel %vm629_vm15, %v667_v49, 0.0  ;;  %v1484_v38 = vpack.c.bf16 %v1111_v37, %v1110_v44 }
 0x331   :  { %v598_v63 = vadd.s32 %v597_v40, %v595_v42  ;;  %v776_v45 = vadd.f32 %v1768_v5, %v701_v56  ;;  %v610_v46 = vshll.u32 %v609_v43, 16 }
 0x332   :  { %v605_v20 = vpop.xlane.xlu1 %604  ;;  %v620_v57 = vpop.xlane.xlu0 %619  ;;  %1485 = vmatprep.subr.bf16.mxu1 %v1484_v38 }
 0x333   :  { %vm630_vm2 = vcmp.lt.s32.totalorder %v598_v63, 3  ;;  %v608_v47 = vcvt.f32.s32 %v605_v20  ;;  %v622_v48 = vcvt.f32.s32 %v620_v57  ;;  %801 = vperm.xlu1 %1499, %v776_v45   ;;  %1487 = vmatpush3.bf16.msra.mxu1 %v1484_v38  ;;  %v1364_v57 = vld [vmem:[%s1905_s10] ss:$0 sm:$0xff] }
 0x334   :  { %v702_v2 = vsel %vm630_vm2, %v1846_v50, 0.0  ;;  %1459 = vmatprep.subr.mxu1 %v1585_v1 }
 0x335   :  { %v611_v52 = vadd.s32 %v610_v46, %v608_v47  ;;  %v777_v54 = vadd.f32 %v1770_v9, %v702_v2  ;;  %v623_v58 = vshll.u32 %v622_v48, 16  ;;  %v814_v9 = vsub.s32 %v1719_v18, %v1717_v17 }
 0x336   :  { %v618_v55 = vpop.xlane.xlu0 %617  ;;  %v763_v62 = vpop.permute.xlu1 %762 }
 0x337   :  { %v621_v59 = vcvt.f32.s32 %v618_v55  ;;  %804 = vperm.xlu0 %1498, %v777_v54   ;;  %vm631_vm4 = vcmp.lt.s32.totalorder %v611_v52, 3 }
 0x338   :  { %v703_v5 = vsel %vm631_vm4, %v1848_v51, 0.0 }
 0x339   :  { %v624_v49 = vadd.s32 %v623_v58, %v621_v59 }
 0x33a   :  { %v756_v61 = vpop.permute.xlu0 %755 }
 0x33b   :  { %v778_v0 = vadd.f32 %v756_v61, %v703_v5  ;;  %vm632_vm5 = vcmp.lt.s32.totalorder %v624_v49, 3 }
 0x33c   :  { %v704_v3 = vsel %vm632_vm5, %v1850_v53, 0.0 }
 0x33d   :  { %v779_v4 = vadd.f32 %v763_v62, %v704_v3  ;;  %807 = vperm.xlu1 %1499, %v778_v0  }
 0x33f   :  { %810 = vperm.xlu0 %1498, %v779_v4  }
 0x36d   :  { %v1436_v29 = vpop.f32.mrb[2].mxu1 }
 0x36e   :  { %v949_v30 = vpop.f32.mrb[3].mxu1  ;;  %v955_v34 = vadd.f32 %v1436_v29, %v1359_v32 }
 0x36f   :  { %v950_v33 = vadd.f32 %v1359_v32, %v949_v30 }
 0x3a6   :  { %v793_v50 = vpop.permute.xlu1 %792  ;;  %v790_v6 = vpop.permute.xlu0 %789 }
 0x3a7   :  { %v819_v11 = vrot.slane %v793_v50, %v814_v9  ;;  %v815_v41 = vrot.slane %v790_v6, %v814_v9 }
 0x3a9   :  { %v845_v16 = vsel %vm844_vm6, %v819_v11, %v815_v41 }
 0x3aa   :  { %v796_v7 = vpop.permute.xlu1 %795 }
 0x3ab   :  { %v823_v51 = vrot.slane %v796_v7, %v814_v9 }
 0x3ad   :  { %v847_v21 = vsel %vm846_vm7, %v823_v51, %v845_v16 }
 0x3ae   :  { %v799_v8 = vpop.permute.xlu0 %798 }
 0x3af   :  { %v827_v14 = vrot.slane %v799_v8, %v814_v9 }
 0x3b1   :  { %v849_v22 = vsel %vm848_vm8, %v827_v14, %v847_v21 }
 0x3b2   :  { %v802_v12 = vpop.permute.xlu1 %801 }
 0x3b3   :  { %v831_v53 = vrot.slane %v802_v12, %v814_v9 }
 0x3b5   :  { %v851_v17 = vsel %vm850_vm9, %v831_v53, %v849_v22 }
 0x3b6   :  { %v805_v13 = vpop.permute.xlu0 %804 }
 0x3b7   :  { %v835_v19 = vrot.slane %v805_v13, %v814_v9 }
 0x3b9   :  { %v853_v24 = vsel %vm852_vm10, %v835_v19, %v851_v17 }
 0x3bc   :  { %v808_v23 = vpop.permute.xlu1 %807 }
 0x3bd   :  { %v839_v18 = vrot.slane %v808_v23, %v814_v9 }
 0x3be   :  { %v811_v25 = vpop.permute.xlu0 %810 }
 0x3bf   :  { %v843_v15 = vrot.slane %v811_v25, %v814_v9  ;;  %v855_v26 = vsel %vm854_vm12, %v839_v18, %v853_v24 }
 0x3c1   :  { %v857_v27 = vsel %vm856_vm1, %v843_v15, %v855_v26 }
 0x3c2   :  { %v859_v28 = vsel %vm520_vm11, %v857_v27, 0.0 }
 0x3c3   :  { %860 = vadd.xlane.f32.xlu1 %v859_v28 }
 0x450   :  { %v861_v31 = vpop.xlane.xlu1 %860 }
 0x451   :  { %1506 = vrsqrt.f32 %v861_v31 }
 0x45b   :  { %v1507_v35 = vpop.eup %1506 }
 0x45c   :  { %v958_v36 = vmul.f32 %v1507_v35, %v950_v33  ;;  %v863_v60 = vmul.f32 %v1507_v35, %v857_v27  ;;  %v1035_v10 = vmul.f32 %v1507_v35, %v955_v34 }
 0x45e   :  { %1438 = vmatpush3.msra.mxu0 %v958_v36 }
 0x45f   :  { %1440 = vmatmul.mubr.msk.f32.vlgmr.msra.gmra.mrb[4].mxu0 %vm520_vm11, %v863_v60  ;;  %1442 = vmatprep.subr.mxu0 %v1585_v1 }
 0x460   :  { %1443 = vmatpush3.msra.mxu0 %v1035_v10  ;;  %1444 = vmatprep.mubr.msk.f32.mxu0 %vm1584_vm0, %v1585_v1 }
 0x461   :  { %1454 = vmatprep.subr.mxu0 %v1585_v1 }
 0x463   :  { %1445 = vmatmul.mubr.msk.f32.vlgmr.msra.gmra.mrb[6].mxu0 %vm520_vm11, %v863_v60 }
 0x464   :  { %1456 = vmatprep.mubr.msk.f32.mxu0 %vm1584_vm0, %v1585_v1 }
 0x532   :  { %v1028_v39 = vpop.f32.mrb[4].mxu0 }
 0x533   :  { %v1032_v40 = vmax.f32 %v1028_v39, 0.0  ;;  %v1441_v42 = vpop.f32.mrb[5].mxu0 }
 0x535   :  { %1034 = vst.msk [vmem:[#allocation2] sm:$0xff] %vm1033_vm3, %v1032_v40 }
 0x536   :  { %v1102_v43 = vpop.f32.mrb[6].mxu0 }
 0x537   :  { %v1106_v56 = vmax.f32 %v1102_v43, 0.0  ;;  %v1446_v63 = vpop.f32.mrb[7].mxu0 }
 0x539   :  { %1107 = vst.msk [vmem:[#allocation2 + $0x8] sm:$0xff] %vm1033_vm3, %v1106_v56 }
 0x53c   :  { %v1108_v45 = vld [vmem:[#allocation2] sm:$0xff] }
 0x53d   :  { %1451 = vmatprep.mubr.msk.f32.mxu1 %vm1033_vm3, %v1108_v45 }
 0x540   :  { %v1109_v20 = vld [vmem:[#allocation2 + $0x8] sm:$0xff] }
 0x541   :  { %1452 = vmatmul.mubr.msk.f32.vlgmr.msra.gmra.mrb[4].mxu1 %vm1033_vm3, %v1109_v20 }
 0x542   :  { %1461 = vmatprep.mubr.msk.f32.mxu1 %vm1584_vm0, %v1585_v1 }
 0x614   :  { %v1453_v46 = vpop.f32.mrb[4].mxu1 }
 0x615   :  { %v1197_v47 = vadd.f32 %v1453_v46, %v1364_v57  ;;  %v1191_v48 = vpop.f32.mrb[5].mxu1 }
 0x616   :  { %v1192_v2 = vadd.f32 %v1364_v57, %v1191_v48 }
 0x617   :  { %v1274_v52 = vmul.f32 %v1507_v35, %v1197_v47 }
 0x618   :  { %v1200_v54 = vmul.f32 %v1507_v35, %v1192_v2 }
 0x619   :  { %1460 = vmatpush3.msra.mxu1 %v1274_v52 }
 0x61a   :  { %1455 = vmatpush3.msra.mxu0 %v1200_v54  ;;  %1462 = vmatmul.mubr.msk.f32.vlgmr.msra.gmra.mrb[6].mxu1 %vm520_vm11, %v863_v60 }
 0x61b   :  { %1457 = vmatmul.mubr.msk.f32.vlgmr.msra.gmra.mrb[8].mxu0 %vm520_vm11, %v863_v60 }
 0x6ed   :  { %v1341_v55 = vpop.f32.mrb[6].mxu1 }
 0x6ee   :  { %v1345_v58 = vmax.f32 %v1341_v55, 0.0  ;;  %v1267_v1 = vpop.f32.mrb[8].mxu0  ;;  %v1463_v59 = vpop.f32.mrb[7].mxu1 }
 0x6ef   :  { %v1271_v49 = vmax.f32 %v1267_v1, 0.0  ;;  %v1458_v5 = vpop.f32.mrb[9].mxu0 }
 0x6f0   :  { %1346 = vst.msk [vmem:[%s1906_s11 + $0x8] sm:$0xff] %vm1272_vm13, %v1345_v58 }
 0x6f1   :  { %1273 = vst.msk [vmem:[%s1906_s11] sm:$0xff] %vm1272_vm13, %v1271_v49 }
 0x6f2   :  { %1351 = vsyncpa [#allocation4], 1 }
 0x6f3   :  { %1352 = vsyncpa [#allocation6], 1 }

</bundles_post_ra>
